<compile_context>
chip_gen: v7x
topology: tpu7x:2x2x1
jax: 0.10.0
libtpu: 0.0.40
codegen_flags: <defaults>
</compile_context>

<pallas_src>
import jax
import jax.numpy as jnp
from jax.experimental import pallas as pl
from jax.experimental.pallas import tpu as pltpu


def _add_kernel(x_ref, e_ref, o_ref):
    # x_ref: (TR, TL), e_ref: (1 or TR, TL), o_ref: (TR, TL)
    # astype is an identity when dtypes already match; otherwise we accumulate
    # in the promoted output dtype (PyTorch type-promotion semantics).
    o_ref[...] = x_ref[...].astype(o_ref.dtype) + e_ref[...].astype(o_ref.dtype)


def _round_up(v, m):
    return -(-v // m) * m


def _tpu_vmem_and_is_v7x():
    """Best-effort hardware query; conservative defaults if unavailable."""
    try:
        info = pltpu.get_tpu_info()
        vmem = int(getattr(info, "vmem_capacity_bytes", 128 << 20))
    except Exception:
        vmem = 128 << 20
    # v7x has 64 MiB VMEM per TensorCore (v5e/v6e have 128 MiB).
    return vmem, vmem <= (64 << 20)


def brain_embeddings_forward(x, emb_table, position_ids=None,
                             past_key_values_length=0, *, donate_x=False):
    """Pallas equivalent of BrainEmbeddings.forward.

    x            : (B, S, H)
    emb_table    : (max_position_embeddings, H)
    position_ids : optional (S,), (1, S) or (B, S) int
    donate_x     : optionally alias x's buffer for the output (only when the
                   dtypes match) to avoid an extra B*S*H HBM allocation.
    """
    B, S, H = x.shape
    out_dtype = jnp.promote_types(x.dtype, emb_table.dtype)

    # ---- Resolve position embeddings in the wrapper (no per-row DMAs in kernel) ----
    if position_ids is None:
        # Contiguous rows [past, past + S) of the table — one contiguous slice.
        pos_emb = jax.lax.dynamic_slice_in_dim(
            emb_table, past_key_values_length, S, axis=0)[None]      # (1, S, H)
    else:
        pids = jnp.asarray(position_ids, dtype=jnp.int32)
        if pids.ndim == 1:
            pids = pids[None, :]
        if pids.ndim != 2 or pids.shape[-1] != S or pids.shape[0] not in (1, B):
            raise ValueError(
                f"position_ids must have shape (S,), (1, S) or (B, S); got {pids.shape}")
        # TODO(synk): for (B, S) ids this materializes a (B, S, H) gather in HBM
        # (one extra write+read of the emb stream ~= +33% traffic on this path);
        # fusing the gather in-kernel (PrefetchScalarGridSpec row gather) is not
        # implemented here.
        pos_emb = jnp.take(emb_table, pids, axis=0)                  # (1 or B, S, H)
    Bp = pos_emb.shape[0]

    # ---- Flatten trailing dims: lane-dense 2-D tiling over (rows=B, cols=S*H) ----
    rows, cols = B, S * H
    x2 = x.reshape(rows, cols)
    e2 = pos_emb.reshape(Bp, cols)

    itemsize = max(jnp.dtype(x.dtype).itemsize,
                   jnp.dtype(pos_emb.dtype).itemsize,
                   jnp.dtype(out_dtype).itemsize)

    _, is_v7x = _tpu_vmem_and_is_v7x()
    if is_v7x:
        # Bigger tiles amortize the ~0.35us/step cost against 3.2 TB/s HBM;
        # keep 2*(x + emb + out) tiles under ~48 MiB of v7x's 64 MiB VMEM.
        target_bytes = (8 << 20) if Bp == 1 else (6 << 20)
        vmem_budget = 48 << 20
    else:
        target_bytes = 4 << 20
        vmem_budget = 64 << 20

    # Lane tile: full extent if it fits the per-stream budget, else a multiple of 128.
    min_rows = min(rows, 8)
    if cols <= 128 or cols * min_rows * itemsize <= target_bytes:
        tl = cols
    else:
        tl = max(128, (target_bytes // (min_rows * itemsize)) // 128 * 128)

    # Row tile: multiple of 8, or the full row extent.
    tr = max(1, target_bytes // max(1, tl * itemsize))
    if tr >= rows:
        tr = rows
    else:
        tr = min(max(8, (tr // 8) * 8), rows)

    n_lane = pl.cdiv(cols, tl)
    n_row = pl.cdiv(rows, tr)

    # v7x has 2 TensorCores: make sure a "parallel" axis has >= 2 tiles.
    if is_v7x and n_lane * n_row == 1:
        if rows >= 16:
            tr = _round_up(rows // 2, 8)
        elif cols >= 256:
            tl = _round_up(-(-cols // 2), 128)
        n_lane = pl.cdiv(cols, tl)
        n_row = pl.cdiv(rows, tr)

    # Row (batch) axis is the innermost grid axis: when Bp == 1 the emb block
    # index is constant across consecutive iterations, so it is not re-DMA'd.
    grid = (n_lane, n_row)

    x_spec = pl.BlockSpec((tr, tl), lambda l, r: (r, l))
    out_spec = pl.BlockSpec((tr, tl), lambda l, r: (r, l))
    if Bp == 1:
        e_spec = pl.BlockSpec((1, tl), lambda l, r: (0, l))
    else:
        e_spec = pl.BlockSpec((tr, tl), lambda l, r: (r, l))

    tile_bytes = (tr * tl * jnp.dtype(x.dtype).itemsize
                  + (1 if Bp == 1 else tr) * tl * jnp.dtype(pos_emb.dtype).itemsize
                  + tr * tl * jnp.dtype(out_dtype).itemsize)
    vmem_limit = int(min(vmem_budget, max(16 << 20, 2 * tile_bytes + (4 << 20))))

    call_kwargs = {}
    if donate_x and jnp.dtype(x.dtype) == jnp.dtype(out_dtype):
        call_kwargs["input_output_aliases"] = {0: 0}

    out2 = pl.pallas_call(
        _add_kernel,
        out_shape=jax.ShapeDtypeStruct((rows, cols), out_dtype),
        grid=grid,
        in_specs=[x_spec, e_spec],
        out_specs=out_spec,
        compiler_params=pltpu.CompilerParams(
            dimension_semantics=("parallel", "parallel"),
            vmem_limit_bytes=vmem_limit),
        **call_kwargs,
    )(x2, e2)

    return out2.reshape(B, S, H)


if __name__ == "__main__":
    B, S, H = 2, 8, 32
    max_position_embeddings = 16

    key = jax.random.PRNGKey(0)
    k_x, k_emb = jax.random.split(key)

    x = jax.random.normal(k_x, (B, S, H), dtype=jnp.float32)
    # nn.Embedding weight ~ N(0, 1), initialized deterministically here.
    emb_table = jax.random.normal(k_emb, (max_position_embeddings, H),
                                  dtype=jnp.float32)

    # 1) Default position ids with a past_key_values_length offset.
    past = 2
    out = jax.block_until_ready(
        brain_embeddings_forward(x, emb_table, position_ids=None,
                                 past_key_values_length=past))
    ref = x + emb_table[past:past + S][None, :, :]
    assert out.shape == (B, S, H)
    assert out.dtype == jnp.float32
    assert jnp.allclose(out, ref, atol=1e-6), "mismatch vs reference (default ids)"

    # 2) Explicit (1, S) position ids (broadcast gather path).
    pids = jnp.arange(S, dtype=jnp.int32)[None, ::-1]
    out2 = jax.block_until_ready(
        brain_embeddings_forward(x, emb_table, position_ids=pids))
    ref2 = x + emb_table[pids[0]][None, :, :]
    assert jnp.allclose(out2, ref2, atol=1e-6), "mismatch vs reference (1,S ids)"

    # 3) Explicit (B, S) position ids (per-batch gather path).
    pids_b = jnp.stack([jnp.arange(S), jnp.arange(S)[::-1]]).astype(jnp.int32)
    out3 = jax.block_until_ready(
        brain_embeddings_forward(x, emb_table, position_ids=pids_b))
    ref3 = x + emb_table[pids_b]
    assert jnp.allclose(out3, ref3, atol=1e-6), "mismatch vs reference (B,S ids)"

    print("KERNEL_OK")
</pallas_src>

<mosaic_0001>
module attributes {stable_mosaic.version = 11 : i64} {
  func.func @_add_kernel(%arg0: i32, %arg1: i32, %arg2: memref<2x256xf32, #tpu.memory_space<vmem>>, %arg3: memref<1x256xf32, #tpu.memory_space<vmem>>, %arg4: memref<2x256xf32, #tpu.memory_space<vmem>>) attributes {dimension_semantics = [#tpu.dimension_semantics<parallel>, #tpu.dimension_semantics<parallel>], iteration_bounds = array<i64: 1, 1>, scalar_prefetch = 0 : i64, scratch_operands = 0 : i64, tpu.core_type = #tpu.core_type<tc>, window_params = [{transform_indices = @transform_0, window_bounds = array<i64: 2, 256>}, {transform_indices = @transform_1, window_bounds = array<i64: 1, 256>}, {transform_indices = @transform_2, window_bounds = array<i64: 2, 256>}]} {
    %c0 = arith.constant 0 : index
    %c0_0 = arith.constant 0 : index
    %0 = vector.load %arg2[%c0, %c0_0] : memref<2x256xf32, #tpu.memory_space<vmem>>, vector<2x256xf32>
    %c0_1 = arith.constant 0 : index
    %c0_2 = arith.constant 0 : index
    %1 = vector.load %arg3[%c0_1, %c0_2] : memref<1x256xf32, #tpu.memory_space<vmem>>, vector<1x256xf32>
    %2 = vector.broadcast %1 : vector<1x256xf32> to vector<2x256xf32>
    %3 = arith.addf %0, %2 : vector<2x256xf32>
    %c0_3 = arith.constant 0 : index
    %c0_4 = arith.constant 0 : index
    %4 = vector.load %arg4[%c0_3, %c0_4] : memref<2x256xf32, #tpu.memory_space<vmem>>, vector<2x256xf32>
    tpu.vector_store %arg4[%c0_3, %c0_4], %3 {strides = array<i32>} : memref<2x256xf32, #tpu.memory_space<vmem>>, vector<2x256xf32>,
    return
  }
  func.func @transform_0(%arg0: i32, %arg1: i32) -> (i32, i32) {
    %c0_i32 = arith.constant 0 : i32
    return %arg1, %arg0 : i32, i32
  }
  func.func @transform_1(%arg0: i32, %arg1: i32) -> (i32, i32) {
    %c0_i32 = arith.constant 0 : i32
    %c0_i32_0 = arith.constant 0 : i32
    return %c0_i32, %arg0 : i32, i32
  }
  func.func @transform_2(%arg0: i32, %arg1: i32) -> (i32, i32) {
    %c0_i32 = arith.constant 0 : i32
    return %arg1, %arg0 : i32, i32
  }
}

</mosaic_0001>

<bundles_post_ra>
// kernel: tpu_custom_call.1
= control target key start
LH: loop header
LB: loop body
LE: loop exit
PB: predicated region body
PF: predicated region fallthrough
CT: control target
= control target key end

     0   :  { %7 = vsyncpa [#allocation3], 0  ;;  %s157_s0 = inlined_call_operand.hbm [shape: f32[2,256], index: 0, kind: input, shape index: {}]   ;;  %s158_s1 = inlined_call_operand.vmem [shape: f32[1,256], index: 1, kind: input, shape index: {}]   ;;  %s159_s2 = inlined_call_operand.hbm [shape: f32[2,256], index: 2, kind: output, shape index: {}]  }
   0x1   :  { %8 = vsyncpa [#allocation4], 0  ;;  %s112_s9 = smov [#allocation2]   ;;  %s64_s13 = scalar_lea.hbm %s157_s0, 64 }
   0x2   :  { %s15_s10 = sshll.u32 %s112_s9, 4  ;;  %p65_p0 = scmp.ne.s32.totalorder %s157_s0, %s64_s13  ;;  %s16_s10 = int_to_ptr.vmem [resolvable:$true] %s15_s10 }
   0x3   :  { %p68_p1 = scmp.lt.u32.totalorder %s64_s13, %s157_s0 }
   0x5   :  { %p70_p2 = pnand %p68_p1, %p65_p0 }
   0x7   :  { %73 = shalt.err (!%p70_p2)
}
   0x8   :  { %s74_s18 = scalar_lea.vmem %s16_s10, 64  ;;  %p79_p4 = scmp.lt.s32.totalorder %s16_s10, %s16_s10 }
   0x9   :  { %p75_p3 = scmp.ne.s32.totalorder %s16_s10, %s74_s18  ;;  %p80_p5 = scmp.lt.s32.totalorder %s74_s18, %s74_s18 }
   0xb   :  { %p81_p6 = por %p80_p5, %p79_p4 }
   0xd   :  { %p82_p7 = pnand %p81_p6, %p75_p3 }
   0xf   :  { %85 = shalt.err (!%p82_p7)
}
  0x10   :  { %18 = dma.hbm_to_vmem [thread:$0]  %s157_s0, 64, %s16_s10, [#allocation3]  }
  0x11   :  { %108 = dma.done.wait [#allocation3], 64  }
  0x12   :  { %109 = vsyncadd [#allocation3], 4294967232  ;;  %v27_v0 = vlaneseq  ;;  %v113_v1 = vmov 1983009808   ;;  %v25_v7 = vld [vmem:[%s158_s1] sm:$0x3] }
  0x13   :  { %v37_v2 = vunpack.c.l.s4 %v113_v1  ;;  %v24_v12 = vld [vmem:[#allocation2] sm:$0xf]  ;;  %s114_s23 = smov [#allocation5]  }
  0x14   :  { %v28_v3 = vshrl.u32 %v27_v0, 7  ;;  %s52_s0 = sshll.u32 %s114_s23, 4  ;;  %s53_s0 = int_to_ptr.vmem [resolvable:$true] %s52_s0 }
  0x15   :  { %v38_v6 = vunpack.c.0.s8 %v37_v2  ;;  %s86_s24 = scalar_lea.vmem %s53_s0, 64  ;;  %p91_p9 = scmp.lt.s32.totalorder %s53_s0, %s53_s0 }
  0x16   :  { %v29_v4 = vsub.s32 0, %v28_v3  ;;  %v33_v5 = vsub.s32 1, %v28_v3  ;;  %p87_p8 = scmp.ne.s32.totalorder %s53_s0, %s86_s24  ;;  %p92_p10 = scmp.lt.s32.totalorder %s86_s24, %s86_s24 }
  0x17   :  { %v41_v10 = vsub.s32 %v38_v6, %v28_v3 }
  0x18   :  { %v30_v8 = vrot.slane %v25_v7, %v29_v4  ;;  %v34_v9 = vrot.slane %v25_v7, %v33_v5  ;;  %p93_p11 = por %p92_p10, %p91_p9 }
  0x1a   :  { %v35_v11 = vcombine.low %v30_v8, %v34_v9  ;;  %p94_p12 = pnand %p93_p11, %p87_p8 }
  0x1c   :  { %v42_v13 = vrot.slane %v35_v11, %v41_v10 }
  0x1e   :  { %v44_v14 = vadd.f32 %v42_v13, %v24_v12 }
  0x20   :  { %45 = vst [vmem:[#allocation5] sm:$0xf] %v44_v14 }
  0x21   :  { %97 = shalt.err (!%p94_p12)
}
  0x22   :  { %s98_s26 = scalar_lea.hbm %s159_s2, 64 }
  0x23   :  { %p99_p13 = scmp.ne.s32.totalorder %s159_s2, %s98_s26  ;;  %p102_p0 = scmp.lt.u32.totalorder %s98_s26, %s159_s2 }
  0x25   :  { %p104_p1 = pnand %p102_p0, %p99_p13 }
  0x27   :  { %107 = shalt.err (!%p104_p1)
}
  0x28   :  { %55 = dma.vmem_to_hbm [thread:$0]  %s53_s0, 64, %s159_s2, [#allocation4]  }
  0x29   :  { %110 = dma.done.wait [#allocation4], 64  }
  0x2a   :  { %111 = vsyncadd [#allocation4], 4294967232 }
  0x2b   :  { %59 = vsyncpa [#allocation3], 1 }
  0x2c   :  { %60 = vsyncpa [#allocation4], 1 }

</bundles_post_ra>
